<compile_context>
chip_gen: v7x
topology: tpu7x:2x2x1
jax: 0.10.0
libtpu: 0.0.40
codegen_flags: <defaults>
</compile_context>

<pallas_src>
import functools
import math

import jax
import jax.numpy as jnp
from jax.experimental import pallas as pl
from jax.experimental.pallas import tpu as pltpu


def _round_up(x, m):
    return ((x + m - 1) // m) * m


def _tile(dim, target, align):
    """Largest multiple of `align` <= target that evenly divides dim, else full dim."""
    if dim <= target:
        return dim
    t = (target // align) * align
    while t >= align:
        if dim % t == 0:
            return t
        t -= align
    return dim


@functools.lru_cache(maxsize=1)
def _vmem_limit_bytes():
    # Generation-aware scoped-VMEM request: ~75% of physical per-core VMEM
    # (~48 MiB on v7x's 64 MiB, ~96 MiB on v5e/v6e's 128 MiB).
    try:
        cap = pltpu.get_tpu_info().vmem_capacity_bytes
        return int(cap) * 3 // 4
    except Exception:
        return 64 * 1024 * 1024


def _cparams(dims):
    return pltpu.CompilerParams(dimension_semantics=dims,
                                vmem_limit_bytes=_vmem_limit_bytes())


# ---------------------------------------------------------------------------
# Tiled linear (x @ W + b, optional GELU) -- bf16 MXU, f32 accumulation
# ---------------------------------------------------------------------------

def _linear_kernel(x_ref, w_ref, b_ref, o_ref, acc_ref, *, activation):
    @pl.when(pl.program_id(2) == 0)
    def _():
        acc_ref[...] = jnp.zeros_like(acc_ref)

    acc_ref[...] += jnp.dot(x_ref[...], w_ref[...],
                            preferred_element_type=jnp.float32)

    @pl.when(pl.program_id(2) == pl.num_programs(2) - 1)
    def _():
        y = acc_ref[...] + b_ref[...].astype(jnp.float32)
        if activation == "gelu":
            y = jax.nn.gelu(y, approximate=True)
        o_ref[...] = y.astype(o_ref.dtype)


def linear(x, w, b, activation=None, out_dtype=jnp.bfloat16):
    """y = act(x @ w + b); x:(N, d_in) bf16, w:(d_in, d_out) bf16, b:(1, d_out) f32."""
    n, d_in = x.shape
    d_out = w.shape[1]
    tm = _tile(n, 512, 16)                                   # 16-row aligned (bf16 packing)
    tn = d_out if d_out <= 3072 else _tile(d_out, 2048, 128)  # big N tiles / full width
    tk = _tile(d_in, 1024, 128)
    grid = (n // tm, d_out // tn, d_in // tk)
    kernel = functools.partial(_linear_kernel, activation=activation)
    return pl.pallas_call(
        kernel,
        grid=grid,
        in_specs=[
            pl.BlockSpec((tm, tk), lambda i, j, k: (i, k)),
            pl.BlockSpec((tk, tn), lambda i, j, k: (k, j)),
            pl.BlockSpec((1, tn), lambda i, j, k: (0, j)),
        ],
        out_specs=pl.BlockSpec((tm, tn), lambda i, j, k: (i, j)),
        out_shape=jax.ShapeDtypeStruct((n, d_out), out_dtype),
        scratch_shapes=[pltpu.VMEM((tm, tn), jnp.float32)],
        compiler_params=_cparams(("parallel", "parallel", "arbitrary")),
    )(x, w, b)


# ---------------------------------------------------------------------------
# Linear + residual-add + LayerNorm fused in the matmul epilogue
# (d_out kept un-tiled so per-row LN statistics are complete in one block)
# ---------------------------------------------------------------------------

def _linear_add_ln_kernel(x_ref, w_ref, b_ref, r_ref, g_ref, bb_ref, o_ref,
                          acc_ref, *, eps):
    @pl.when(pl.program_id(1) == 0)
    def _():
        acc_ref[...] = jnp.zeros_like(acc_ref)

    acc_ref[...] += jnp.dot(x_ref[...], w_ref[...],
                            preferred_element_type=jnp.float32)

    @pl.when(pl.program_id(1) == pl.num_programs(1) - 1)
    def _():
        h = acc_ref[...] + b_ref[...].astype(jnp.float32) + r_ref[...].astype(jnp.float32)
        mu = jnp.mean(h, axis=-1, keepdims=True)
        var = jnp.mean((h - mu) ** 2, axis=-1, keepdims=True)
        y = (h - mu) * jax.lax.rsqrt(var + eps) * g_ref[...] + bb_ref[...]
        o_ref[...] = y.astype(o_ref.dtype)


def linear_add_layernorm(x, w, b, residual, gamma, beta, eps=1e-5,
                         out_dtype=jnp.bfloat16):
    """LayerNorm(x @ w + b + residual) in a single pallas_call."""
    n, d_in = x.shape
    d_out = w.shape[1]
    tm = _tile(n, 512, 16)
    tk = _tile(d_in, 1024, 128)
    grid = (n // tm, d_in // tk)
    return pl.pallas_call(
        functools.partial(_linear_add_ln_kernel, eps=eps),
        grid=grid,
        in_specs=[
            pl.BlockSpec((tm, tk), lambda i, k: (i, k)),
            pl.BlockSpec((tk, d_out), lambda i, k: (k, 0)),
            pl.BlockSpec((1, d_out), lambda i, k: (0, 0)),
            pl.BlockSpec((tm, d_out), lambda i, k: (i, 0)),
            pl.BlockSpec((1, d_out), lambda i, k: (0, 0)),
            pl.BlockSpec((1, d_out), lambda i, k: (0, 0)),
        ],
        out_specs=pl.BlockSpec((tm, d_out), lambda i, k: (i, 0)),
        out_shape=jax.ShapeDtypeStruct((n, d_out), out_dtype),
        scratch_shapes=[pltpu.VMEM((tm, d_out), jnp.float32)],
        compiler_params=_cparams(("parallel", "arbitrary")),
    )(x, w, b, residual, gamma, beta)


# ---------------------------------------------------------------------------
# Standalone LayerNorm (embedding LN) -- row-tiled, f32 math, bf16 output
# ---------------------------------------------------------------------------

def _layernorm_kernel(x_ref, g_ref, b_ref, o_ref, *, eps):
    h = x_ref[...].astype(jnp.float32)
    mu = jnp.mean(h, axis=-1, keepdims=True)
    var = jnp.mean((h - mu) ** 2, axis=-1, keepdims=True)
    y = (h - mu) * jax.lax.rsqrt(var + eps) * g_ref[...] + b_ref[...]
    o_ref[...] = y.astype(o_ref.dtype)


def layernorm(x, gamma, beta, eps=1e-5, out_dtype=jnp.bfloat16):
    n, d = x.shape
    tm = _tile(n, 512, 16)
    row = pl.BlockSpec((tm, d), lambda i: (i, 0))
    par = pl.BlockSpec((1, d), lambda i: (0, 0))
    return pl.pallas_call(
        functools.partial(_layernorm_kernel, eps=eps),
        grid=(n // tm,),
        in_specs=[row, par, par],
        out_specs=row,
        out_shape=jax.ShapeDtypeStruct((n, d), out_dtype),
        compiler_params=_cparams(("parallel",)),
    )(x, gamma, beta)


# ---------------------------------------------------------------------------
# Multi-head self-attention -- one grid cell per batch element.
# q/k/v are windowed straight out of the fused (B, S, 3D) QKV slab via
# BlockSpec lane-block indices 0/1/2 (no jnp.split / HBM copies).  The pad
# mask is converted ONCE to an additive (1, S) bias; the per-head contexts
# are concatenated and stored as one lane-dense (S, D) slab.
# ---------------------------------------------------------------------------

def _attn_kernel(q_ref, k_ref, v_ref, m_ref, o_ref, *maybe_a,
                 scale, num_heads, save_attn):
    q = q_ref[0]                                   # (S, D) bf16
    k = k_ref[0]
    v = v_ref[0]
    bias = m_ref[0] * jnp.float32(-1e9)            # (1, S) additive pad-key bias (hoisted)
    D = q.shape[1]
    dh = D // num_heads
    a_ref = maybe_a[0] if save_attn else None

    ctx_parts = []
    for h in range(num_heads):
        lo, hi = h * dh, (h + 1) * dh
        qh = q[:, lo:hi]
        kh = k[:, lo:hi]
        vh = v[:, lo:hi]
        # q @ k^T via dot_general contracting last dims (no explicit transpose).
        s = jax.lax.dot_general(qh, kh, (((1,), (1,)), ((), ())),
                                preferred_element_type=jnp.float32)
        s = s * scale + bias
        s = s - jnp.max(s, axis=-1, keepdims=True)
        p = jnp.exp(s)
        p = p * pl.reciprocal(jnp.sum(p, axis=-1, keepdims=True), approx=True)
        if save_attn:
            a_ref[0, h] = p.astype(a_ref.dtype)
        ctx_parts.append(jnp.dot(p.astype(vh.dtype), vh,
                                 preferred_element_type=jnp.float32))
    # single full-width lane-dense store (no per-head masked partial stores)
    o_ref[0] = jnp.concatenate(ctx_parts, axis=-1).astype(o_ref.dtype)


def attention(qkv, pad_mask, num_heads, save_attn):
    """qkv:(B,S,3D) bf16 fused projection; pad_mask:(B,1,S) f32 (1.0 == pad key)."""
    B, S, D3 = qkv.shape
    D = D3 // 3
    scale = 1.0 / math.sqrt(D // num_heads)
    kernel = functools.partial(_attn_kernel, scale=scale,
                               num_heads=num_heads, save_attn=save_attn)
    q_spec = pl.BlockSpec((1, S, D), lambda b: (b, 0, 0))   # lane-block 0 of the slab
    k_spec = pl.BlockSpec((1, S, D), lambda b: (b, 0, 1))   # lane-block 1
    v_spec = pl.BlockSpec((1, S, D), lambda b: (b, 0, 2))   # lane-block 2
    m_spec = pl.BlockSpec((1, 1, S), lambda b: (b, 0, 0))
    ctx_spec = pl.BlockSpec((1, S, D), lambda b: (b, 0, 0))
    ctx_shape = jax.ShapeDtypeStruct((B, S, D), jnp.bfloat16)
    cparams = _cparams(("parallel",))

    if save_attn:
        attn_spec = pl.BlockSpec((1, num_heads, S, S), lambda b: (b, 0, 0, 0))
        attn_shape = jax.ShapeDtypeStruct((B, num_heads, S, S), jnp.float32)
        ctx, attn = pl.pallas_call(
            kernel, grid=(B,),
            in_specs=[q_spec, k_spec, v_spec, m_spec],
            out_specs=(ctx_spec, attn_spec),
            out_shape=(ctx_shape, attn_shape),
            compiler_params=cparams,
        )(qkv, qkv, qkv, pad_mask)
        return ctx, attn

    ctx = pl.pallas_call(
        kernel, grid=(B,),
        in_specs=[q_spec, k_spec, v_spec, m_spec],
        out_specs=ctx_spec,
        out_shape=ctx_shape,
        compiler_params=cparams,
    )(qkv, qkv, qkv, pad_mask)
    return ctx, None


# ---------------------------------------------------------------------------
# Parameter init (deterministic, synthetic) -- matmul weights in bf16,
# QKV pre-fused, vocab projection padded to a 256-lane multiple if needed.
# ---------------------------------------------------------------------------

def init_params(key, vocab_size, max_len, num_blocks, d_model, d_ffn, num_heads):
    def dense(k, din, dout):
        w = (0.02 * jax.random.normal(k, (din, dout), jnp.float32)).astype(jnp.bfloat16)
        return w, jnp.zeros((1, dout), jnp.float32)

    if vocab_size > 128 and vocab_size % 128 != 0:
        vocab_padded = _round_up(vocab_size, 256)   # keep the logits linear N-tileable
    else:
        vocab_padded = vocab_size

    keys = jax.random.split(key, 4 + num_blocks)
    params = {
        "vocab_size": vocab_size,
        "tok_emb": 0.02 * jax.random.normal(keys[0], (vocab_size, d_model), jnp.float32),
        "seg_emb": 0.02 * jax.random.normal(keys[1], (2, d_model), jnp.float32),
        "pos_emb": 0.02 * jax.random.normal(keys[2], (max_len, d_model), jnp.float32),
        "emb_ln_g": jnp.ones((1, d_model), jnp.float32),
        "emb_ln_b": jnp.zeros((1, d_model), jnp.float32),
        "blocks": [],
    }
    for i in range(num_blocks):
        bk = jax.random.split(keys[3 + i], 4)
        wqkv, bqkv = dense(bk[0], d_model, 3 * d_model)   # fused QKV built once, at init
        wo, bo = dense(bk[1], d_model, d_model)
        w1, b1 = dense(bk[2], d_model, d_ffn)
        w2, b2 = dense(bk[3], d_ffn, d_model)
        params["blocks"].append(dict(
            wqkv=wqkv, bqkv=bqkv, wo=wo, bo=bo, w1=w1, b1=b1, w2=w2, b2=b2,
            ln1_g=jnp.ones((1, d_model), jnp.float32),
            ln1_b=jnp.zeros((1, d_model), jnp.float32),
            ln2_g=jnp.ones((1, d_model), jnp.float32),
            ln2_b=jnp.zeros((1, d_model), jnp.float32),
        ))
    wout, bout = dense(keys[3 + num_blocks], d_model, vocab_padded)   # dedicated key
    params["w_out"] = wout
    params["b_out"] = bout
    return params


# ---------------------------------------------------------------------------
# BERT forward
# ---------------------------------------------------------------------------

def bert_forward(params, x, seg, pad_idx, num_heads, save_attn_patterns=True,
                 logits_dtype=jnp.float32):
    """x, seg: (B, S) int32.  Returns (logits (B,S,V), attn_patterns (L,B,H,S,S) or None)."""
    B, S = x.shape
    d_model = params["tok_emb"].shape[1]
    vocab = params["vocab_size"]

    # embeddings (gathers = glue, plain JAX, f32) + residual-free LayerNorm
    h = params["tok_emb"][x] + params["seg_emb"][seg] + params["pos_emb"][None, :S, :]
    h = layernorm(h.reshape(B * S, d_model), params["emb_ln_g"], params["emb_ln_b"])
    # TODO(synk): dropout is identity (inference mode).

    # pad mask: same semantics as PyTorch (x == pad_idx) expanded over heads/queries,
    # carried compactly as a (B, 1, S) key-row and applied as an additive bias in-kernel.
    pad_mask = (x == pad_idx).astype(jnp.float32).reshape(B, 1, S)

    attn_patterns = []
    for blk in params["blocks"]:
        qkv = linear(h, blk["wqkv"], blk["bqkv"])                    # (B*S, 3D) bf16 fused QKV
        ctx, attn = attention(qkv.reshape(B, S, 3 * d_model), pad_mask,
                              num_heads, save_attn_patterns)
        if save_attn_patterns:
            attn_patterns.append(attn)

        # attention output projection + residual + LayerNorm, one fused kernel
        h = linear_add_layernorm(ctx.reshape(B * S, d_model), blk["wo"], blk["bo"],
                                 h, blk["ln1_g"], blk["ln1_b"])

        f = linear(h, blk["w1"], blk["b1"], activation="gelu")
        # FFN-2 + residual + LayerNorm, one fused kernel
        h = linear_add_layernorm(f, blk["w2"], blk["b2"],
                                 h, blk["ln2_g"], blk["ln2_b"])

    # NOTE: emit bf16 here (logits_dtype=jnp.bfloat16) to halve the largest HBM write
    # when a downstream loss tolerates it; default stays f32 to match the reference.
    logits = linear(h, params["w_out"], params["b_out"], out_dtype=logits_dtype)
    logits = logits.reshape(B, S, -1)[..., :vocab]                   # drop vocab padding cols
    if save_attn_patterns:
        return logits, jnp.stack(attn_patterns)                      # (L, B, H, S, S)
    return logits, None


# ---------------------------------------------------------------------------
# Demo
# ---------------------------------------------------------------------------

if __name__ == "__main__":
    pad_idx = 0
    vocab_size = 64
    max_len = 16
    num_blocks = 2
    d_model = 128      # lane-aligned small width (multiple of 128)
    d_ffn = 256
    num_heads = 4
    p_dropout = 0.1    # inference mode: unused

    B, S = 2, 8

    root = jax.random.PRNGKey(0)
    k_par, k_tok, k_seg = jax.random.split(root, 3)

    params = init_params(k_par, vocab_size, max_len, num_blocks, d_model, d_ffn, num_heads)

    x = jax.random.randint(k_tok, (B, S), 1, vocab_size, dtype=jnp.int32)
    x = x.at[:, -2:].set(pad_idx)                                    # trailing <PAD> tokens
    seg = jax.random.randint(k_seg, (B, S), 0, 2, dtype=jnp.int32)

    logits, attn_patterns = bert_forward(params, x, seg, pad_idx, num_heads,
                                         save_attn_patterns=True)
    jax.block_until_ready((logits, attn_patterns))

    assert logits.shape == (B, S, vocab_size)
    assert attn_patterns.shape == (num_blocks, B, num_heads, S, S)
    print("KERNEL_OK")
</pallas_src>

<mosaic_0001>
module attributes {stable_mosaic.version = 11 : i64} {
  func.func @_layernorm_kernel(%arg0: i32, %arg1: memref<16x128xf32, #tpu.memory_space<vmem>>, %arg2: memref<1x128xf32, #tpu.memory_space<vmem>>, %arg3: memref<1x128xf32, #tpu.memory_space<vmem>>, %arg4: memref<16x128xbf16, #tpu.memory_space<vmem>>) attributes {dimension_semantics = [#tpu.dimension_semantics<parallel>], iteration_bounds = array<i64: 1>, scalar_prefetch = 0 : i64, scratch_operands = 0 : i64, tpu.core_type = #tpu.core_type<tc>, window_params = [{transform_indices = @transform_0, window_bounds = array<i64: 16, 128>}, {pipeline_mode = #tpu.pipeline_mode<synchronous>, transform_indices = @transform_1, window_bounds = array<i64: 1, 128>}, {pipeline_mode = #tpu.pipeline_mode<synchronous>, transform_indices = @transform_2, window_bounds = array<i64: 1, 128>}, {transform_indices = @transform_3, window_bounds = array<i64: 16, 128>}]} {
    %c0 = arith.constant 0 : index
    %c0_0 = arith.constant 0 : index
    %0 = vector.load %arg1[%c0, %c0_0] : memref<16x128xf32, #tpu.memory_space<vmem>>, vector<16x128xf32>
    %cst = arith.constant dense<0.000000e+00> : vector<16xf32>
    %1 = vector.multi_reduction <add>, %0, %cst [1] : vector<16x128xf32> to vector<16xf32>
    %2 = vector.shape_cast %1 : vector<16xf32> to vector<16x1xf32>
    %cst_1 = arith.constant 1.280000e+02 : f32
    %3 = vector.broadcast %cst_1 : f32 to vector<16x1xf32>
    %4 = arith.divf %2, %3 : vector<16x1xf32>
    %5 = vector.broadcast %4 : vector<16x1xf32> to vector<16x128xf32>
    %6 = arith.subf %0, %5 : vector<16x128xf32>
    %7 = arith.mulf %6, %6 : vector<16x128xf32>
    %cst_2 = arith.constant dense<0.000000e+00> : vector<16xf32>
    %8 = vector.multi_reduction <add>, %7, %cst_2 [1] : vector<16x128xf32> to vector<16xf32>
    %9 = vector.shape_cast %8 : vector<16xf32> to vector<16x1xf32>
    %cst_3 = arith.constant 1.280000e+02 : f32
    %10 = vector.broadcast %cst_3 : f32 to vector<16x1xf32>
    %11 = arith.divf %9, %10 : vector<16x1xf32>
    %12 = vector.broadcast %4 : vector<16x1xf32> to vector<16x128xf32>
    %13 = arith.subf %0, %12 : vector<16x128xf32>
    %cst_4 = arith.constant 9.99999974E-6 : f32
    %14 = vector.broadcast %cst_4 : f32 to vector<16x1xf32>
    %15 = arith.addf %11, %14 : vector<16x1xf32>
    %16 = math.rsqrt %15 : vector<16x1xf32>
    %17 = vector.broadcast %16 : vector<16x1xf32> to vector<16x128xf32>
    %18 = arith.mulf %13, %17 : vector<16x128xf32>
    %c0_5 = arith.constant 0 : index
    %c0_6 = arith.constant 0 : index
    %19 = vector.load %arg2[%c0_5, %c0_6] : memref<1x128xf32, #tpu.memory_space<vmem>>, vector<1x128xf32>
    %20 = vector.broadcast %19 : vector<1x128xf32> to vector<16x128xf32>
    %21 = arith.mulf %18, %20 : vector<16x128xf32>
    %c0_7 = arith.constant 0 : index
    %c0_8 = arith.constant 0 : index
    %22 = vector.load %arg3[%c0_7, %c0_8] : memref<1x128xf32, #tpu.memory_space<vmem>>, vector<1x128xf32>
    %23 = vector.broadcast %22 : vector<1x128xf32> to vector<16x128xf32>
    %24 = arith.addf %21, %23 : vector<16x128xf32>
    %25 = arith.truncf %24 : vector<16x128xf32> to vector<16x128xbf16>
    %c0_9 = arith.constant 0 : index
    %c0_10 = arith.constant 0 : index
    %26 = vector.load %arg4[%c0_9, %c0_10] : memref<16x128xbf16, #tpu.memory_space<vmem>>, vector<16x128xbf16>
    tpu.vector_store %arg4[%c0_9, %c0_10], %25 {strides = array<i32>} : memref<16x128xbf16, #tpu.memory_space<vmem>>, vector<16x128xbf16>,
    return
  }
  func.func @transform_0(%arg0: i32) -> (i32, i32) {
    %c0_i32 = arith.constant 0 : i32
    %c0_i32_0 = arith.constant 0 : i32
    return %arg0, %c0_i32 : i32, i32
  }
  func.func @transform_1(%arg0: i32) -> (i32, i32) {
    %c0_i32 = arith.constant 0 : i32
    %c0_i32_0 = arith.constant 0 : i32
    %c0_i32_1 = arith.constant 0 : i32
    return %c0_i32, %c0_i32_0 : i32, i32
  }
  func.func @transform_2(%arg0: i32) -> (i32, i32) {
    %c0_i32 = arith.constant 0 : i32
    %c0_i32_0 = arith.constant 0 : i32
    %c0_i32_1 = arith.constant 0 : i32
    return %c0_i32, %c0_i32_0 : i32, i32
  }
  func.func @transform_3(%arg0: i32) -> (i32, i32) {
    %c0_i32 = arith.constant 0 : i32
    %c0_i32_0 = arith.constant 0 : i32
    return %arg0, %c0_i32 : i32, i32
  }
}

</mosaic_0001>

<bundles_post_ra>
// kernel: tpu_custom_call.1
= control target key start
LH: loop header
LB: loop body
LE: loop exit
PB: predicated region body
PF: predicated region fallthrough
CT: control target
= control target key end

     0   :  { %8 = vsyncpa [#allocation3], 0  ;;  %s323_s0 = inlined_call_operand.hbm [shape: f32[16,128], index: 0, kind: input, shape index: {}]   ;;  %s324_s1 = inlined_call_operand.hbm [shape: f32[1,128], index: 1, kind: input, shape index: {}]   ;;  %s325_s2 = inlined_call_operand.hbm [shape: f32[1,128], index: 2, kind: input, shape index: {}]   ;;  %s326_s3 = inlined_call_operand.hbm [shape: bf16[16,128], index: 3, kind: output, shape index: {}]  }
   0x1   :  { %9 = vsyncpa [#allocation6], 0 }
   0x2   :  { %10 = vsyncpa [#allocation4], 0  ;;  %s240_s12 = smov [#allocation5]   ;;  %s241_s14 = smov [#allocation2]  }
   0x3   :  { %s29_s13 = sshll.u32 %s240_s12, 4  ;;  %s16_s15 = sshll.u32 %s241_s14, 4  ;;  %s30_s13 = int_to_ptr.vmem [resolvable:$true] %s29_s13  ;;  %s268_s15 = int_to_ptr.vmem [resolvable:$true] %s16_s15 }
   0x4   :  { %s146_s18 = scalar_lea.hbm %s324_s1, 16 }
   0x5   :  { %p147_p0 = scmp.ne.s32.totalorder %s324_s1, %s146_s18  ;;  %p150_p1 = scmp.lt.u32.totalorder %s146_s18, %s324_s1 }
   0x7   :  { %p152_p2 = pnand %p150_p1, %p147_p0 }
   0x9   :  { %155 = shalt.err (!%p152_p2)
}
   0xa   :  { %s156_s23 = scalar_lea.vmem %s30_s13, 16  ;;  %s160_s24 = scalar_lea.vmem %s30_s13, 32 }
   0xb   :  { %p157_p3 = scmp.ne.s32.totalorder %s30_s13, %s156_s23  ;;  %p161_p4 = scmp.lt.s32.totalorder %s30_s13, %s30_s13 }
   0xc   :  { %p162_p5 = scmp.lt.s32.totalorder %s160_s24, %s156_s23 }
   0xe   :  { %p163_p6 = por %p162_p5, %p161_p4 }
  0x10   :  { %p164_p7 = pnand %p163_p6, %p157_p3 }
  0x12   :  { %167 = shalt.err (!%p164_p7)
}
  0x13   :  { %32 = dma.hbm_to_vmem [thread:$0]  %s324_s1, 16, %s30_s13, [#allocation6]  }
  0x14   :  { %s168_s29 = scalar_lea.hbm %s323_s0, 256 }
  0x15   :  { %p169_p8 = scmp.ne.s32.totalorder %s323_s0, %s168_s29  ;;  %p172_p9 = scmp.lt.u32.totalorder %s168_s29, %s323_s0 }
  0x17   :  { %p174_p10 = pnand %p172_p9, %p169_p8 }
  0x19   :  { %177 = shalt.err (!%p174_p10)
}
  0x1a   :  { %s178_s7 = scalar_lea.vmem %s268_s15, 256  ;;  %p183_p12 = scmp.lt.s32.totalorder %s268_s15, %s268_s15 }
  0x1b   :  { %p179_p11 = scmp.ne.s32.totalorder %s268_s15, %s178_s7  ;;  %p184_p13 = scmp.lt.s32.totalorder %s178_s7, %s178_s7 }
  0x1d   :  { %p185_p0 = por %p184_p13, %p183_p12 }
  0x1f   :  { %p186_p1 = pnand %p185_p0, %p179_p11 }
  0x21   :  { %189 = shalt.err (!%p186_p1)
}
  0x22   :  { %s242_s1 = smov 128   ;;  %s243_s8 = smov 8  }
  0x23   :  { %22 = dma.hbm_to_vmem [thread:$0]  %s323_s0, 256, %s268_s15, [#allocation3], %s242_s1, %s242_s1, %s243_s8  }
  0x24   :  { %s244_s11 = smov [#allocation7]   ;;  %s190_s16 = scalar_lea.hbm %s325_s2, 16 }
  0x25   :  { %s39_s12 = sshll.u32 %s244_s11, 4  ;;  %p191_p2 = scmp.ne.s32.totalorder %s325_s2, %s190_s16  ;;  %s40_s12 = int_to_ptr.vmem [resolvable:$true] %s39_s12 }
  0x26   :  { %p194_p3 = scmp.lt.u32.totalorder %s190_s16, %s325_s2 }
  0x28   :  { %p196_p4 = pnand %p194_p3, %p191_p2 }
  0x2a   :  { %199 = shalt.err (!%p196_p4)
}
  0x2b   :  { %s200_s21 = scalar_lea.vmem %s40_s12, 16  ;;  %s204_s0 = scalar_lea.vmem %s40_s12, 32 }
  0x2c   :  { %p201_p5 = scmp.ne.s32.totalorder %s40_s12, %s200_s21  ;;  %p205_p6 = scmp.lt.s32.totalorder %s40_s12, %s40_s12 }
  0x2d   :  { %p206_p7 = scmp.lt.s32.totalorder %s204_s0, %s200_s21 }
  0x2f   :  { %p207_p8 = por %p206_p7, %p205_p6 }
  0x31   :  { %p208_p9 = pnand %p207_p8, %p201_p5 }
  0x33   :  { %211 = shalt.err (!%p208_p9)
}
  0x34   :  { %42 = dma.hbm_to_vmem [thread:$0]  %s325_s2, 16, %s40_s12, [#allocation6]  }
  0x35   :  { %234 = dma.done.wait [#allocation3], 256  }
  0x36   :  { %235 = vsyncadd [#allocation3], 4294967040 }
  0x37   :  { %236 = dma.done.wait [#allocation6], 32  }
  0x38   :  { %237 = vsyncadd [#allocation6], 4294967264  ;;  %v52_v0 = vld [vmem:[#allocation2] sm:$0xff]  ;;  %v53_v1 = vld [vmem:[#allocation2 + $0x8] sm:$0xff]  ;;  %s245_s2 = smov [#allocation8]  }
  0x39   :  { %54 = vadd.xlane.f32.xlu0 %v52_v0  ;;  %v123_v18 = vld [vmem:[#allocation5] ss:$0 sm:$0xff]  ;;  %v124_v22 = vld [vmem:[#allocation7] ss:$0 sm:$0xff]  ;;  %s110_s23 = sshll.u32 %s245_s2, 4  ;;  %s111_s23 = int_to_ptr.vmem [resolvable:$true] %s110_s23 }
  0x3a   :  { %s212_s24 = scalar_lea.vmem %s111_s23, 128  ;;  %p217_p11 = scmp.lt.s32.totalorder %s111_s23, %s111_s23 }
  0x3b   :  { %p213_p10 = scmp.ne.s32.totalorder %s111_s23, %s212_s24  ;;  %p218_p12 = scmp.lt.s32.totalorder %s212_s24, %s212_s24 }
  0x3d   :  { %56 = vadd.xlane.f32.xlu0 %v53_v1  ;;  %p219_p13 = por %p218_p12, %p217_p11 }
  0x3f   :  { %p220_p0 = pnand %p219_p13, %p213_p10 }
  0xc6   :  { %v55_v2 = vpop.xlane.xlu0 %54 }
  0xc7   :  { %v59_v3 = vmul.f32 0.0078125, %v55_v2 }
  0xc9   :  { %v61_v4 = vsub.f32 %v52_v0, %v59_v3 }
  0xca   :  { %v57_v5 = vpop.xlane.xlu0 %56 }
  0xcb   :  { %v60_v6 = vmul.f32 0.0078125, %v57_v5  ;;  %v63_v7 = vmul.f32 %v61_v4, %v61_v4 }
  0xcd   :  { %v62_v8 = vsub.f32 %v53_v1, %v60_v6  ;;  %65 = vadd.xlane.f32.xlu1 %v63_v7 }
  0xcf   :  { %v64_v9 = vmul.f32 %v62_v8, %v62_v8 }
  0xd1   :  { %67 = vadd.xlane.f32.xlu1 %v64_v9 }
 0x15a   :  { %v66_v10 = vpop.xlane.xlu1 %65 }
 0x15b   :  { %v69_v11 = vmul.f32 0.0078125, %v66_v10 }
 0x15d   :  { %v71_v12 = vadd.f32 1e-05, %v69_v11 }
 0x15e   :  { %v68_v13 = vpop.xlane.xlu1 %67 }
 0x15f   :  { %142 = vrsqrt.f32 %v71_v12  ;;  %v70_v14 = vmul.f32 0.0078125, %v68_v13 }
 0x161   :  { %v72_v15 = vadd.f32 1e-05, %v70_v14 }
 0x163   :  { %144 = vrsqrt.f32 %v72_v15 }
 0x169   :  { %v143_v16 = vpop.eup %142 }
 0x16a   :  { %v75_v17 = vmul.f32 %v143_v16, %v61_v4 }
 0x16c   :  { %v84_v21 = vmul.f32 %v123_v18, %v75_v17 }
 0x16d   :  { %v145_v19 = vpop.eup %144 }
 0x16e   :  { %v76_v20 = vmul.f32 %v145_v19, %v62_v8  ;;  %v93_v24 = vadd.f32 %v124_v22, %v84_v21 }
 0x170   :  { %v85_v23 = vmul.f32 %v123_v18, %v76_v20 }
 0x172   :  { %v94_v25 = vadd.f32 %v124_v22, %v85_v23 }
 0x174   :  { %v132_v26 = vpack.c.bf16 %v94_v25, %v93_v24 }
 0x176   :  { %133 = vst [vmem:[#allocation8] sm:$0xff] %v132_v26  }
 0x177   :  { %223 = shalt.err (!%p220_p0)
}
 0x178   :  { %s224_s27 = scalar_lea.hbm %s326_s3, 128 }
 0x179   :  { %p225_p1 = scmp.ne.s32.totalorder %s326_s3, %s224_s27  ;;  %p228_p2 = scmp.lt.u32.totalorder %s224_s27, %s326_s3 }
 0x17b   :  { %p230_p3 = pnand %p228_p2, %p225_p1 }
 0x17d   :  { %233 = shalt.err (!%p230_p3)
}
 0x17e   :  { %s246_s5 = smov 64   ;;  %s247_s6 = smov 4  }
 0x17f   :  { %116 = dma.vmem_to_hbm [thread:$0]  %s111_s23, 128, %s326_s3, [#allocation4], %s246_s5, %s246_s5, %s247_s6  }
 0x180   :  { %238 = dma.done.wait [#allocation4], 128  }
 0x181   :  { %239 = vsyncadd [#allocation4], 4294967168 }
 0x182   :  { %120 = vsyncpa [#allocation3], 1 }
 0x183   :  { %121 = vsyncpa [#allocation6], 1 }
 0x184   :  { %122 = vsyncpa [#allocation4], 1 }

</bundles_post_ra>
